<compile_context>
chip_gen: v7x
topology: tpu7x:2x2x1
jax: 0.10.0
libtpu: 0.0.40
codegen_flags: <defaults>
</compile_context>

<pallas_src>
import functools

import jax
import jax.numpy as jnp
from jax.experimental import pallas as pl
from jax.experimental.pallas import tpu as pltpu


# ----------------------------- Pallas kernel -------------------------------
def decoder1d_kernel(x_ref, w0_ref, b0_ref, w1_ref, b1_ref,
                     w2_ref, b2_ref, w3_ref, b3_ref, out_ref, *, n_circular):
    """Fused wide_n_deep MLP + circular decode for one batch-column tile.

    Everything is feature-major / batch-on-lanes:
      x_ref  : (enc_dim, TB)          input tile (f32)
      wK_ref : (out_feat, in_feat)    PyTorch-layout weights (bf16 by default)
      bK_ref : (out_feat, 1)          biases (f32), broadcast along lanes
      out_ref: (n_circ + n_lin, TB)   decoded output tile (f32)

    Final-layer rows were pre-permuted (at param-prep time) to
    [cos_0..cos_{nc-1}, sin_0..sin_{nc-1}, linear_0..linear_{nl-1}].
    """
    cdt = w0_ref.dtype  # matmul operand dtype (bf16 by default)

    # ---- MLP hot path: MXU matmuls (low-precision operands, f32 accumulate),
    # ---- tanh on the EUP in f32 (safe on v5e; on v6e/v7x tanh could also be
    # ---- pushed to bf16 for extra EUP throughput).
    h = x_ref[...].astype(cdt)
    h = jnp.tanh(jnp.dot(w0_ref[...], h,
                         preferred_element_type=jnp.float32) + b0_ref[...])
    h = jnp.tanh(jnp.dot(w1_ref[...], h.astype(cdt),
                         preferred_element_type=jnp.float32) + b1_ref[...])
    h = jnp.tanh(jnp.dot(w2_ref[...], h.astype(cdt),
                         preferred_element_type=jnp.float32) + b2_ref[...])
    enc = jnp.dot(w3_ref[...], h.astype(cdt),
                  preferred_element_type=jnp.float32) + b3_ref[...]

    # ---- circular / linear split + atan2 decode (rows = features) ----
    cos_part = enc[:n_circular, :]
    sin_part = enc[n_circular:2 * n_circular, :]
    lin_part = enc[2 * n_circular:, :]

    # Lane-dense stores (the last dim is the batch tile); the two row-slices
    # only differ in sublane masks and are negligible at out_dim = 6.
    out_ref[:n_circular, :] = jnp.arctan2(sin_part, cos_part)
    out_ref[n_circular:, :] = lin_part


# ------------------------ one-time parameter prep ---------------------------
def prepare_decoder1d_params(params, n_circular, weights_dtype=jnp.bfloat16):
    """Done once at init/load time (NOT per forward call).

    `params` are in PyTorch nn.Linear layout: weight (out_features, in_features),
    bias (out_features,), all f32.

    - Permutes last-layer ROWS so [evens (cos), odds (sin), linear] are
      contiguous blocks (exact w.r.t. the torch module's strided reshape).
    - Casts weights to `weights_dtype` (bf16 default: halves weight traffic and
      hits the native MXU path on v5e/v6e/v7x).  Biases stay f32 and become
      (out_features, 1) columns, broadcasting along the lane/batch axis.
    """
    w0, b0, w1, b1, w2, b2, w3, b3 = params
    total_out = w3.shape[0]
    nc2 = 2 * n_circular
    perm = jnp.concatenate([
        jnp.arange(0, nc2, 2),          # cos rows
        jnp.arange(1, nc2, 2),          # sin rows
        jnp.arange(nc2, total_out),     # linear rows
    ])

    def prep(w, b):
        return w.astype(weights_dtype), b.astype(jnp.float32).reshape(-1, 1)

    w0p, b0p = prep(w0, b0)
    w1p, b1p = prep(w1, b1)
    w2p, b2p = prep(w2, b2)
    w3p, b3p = prep(w3[perm, :], b3[perm])
    return (w0p, b0p, w1p, b1p, w2p, b2p, w3p, b3p)


# ------------------------------- wrapper ------------------------------------
_MIN_VMEM_LIMIT = 32 * 1024 * 1024     # >= every generation's scoped default
_MAX_VMEM_LIMIT = 56 * 1024 * 1024     # < v7x's 64 MiB physical VMEM
_VMEM_TILE_BUDGET = 28 * 1024 * 1024   # per-step live-bytes budget for tiling


def _round_up(v, m):
    return ((v + m - 1) // m) * m


def _vmem_bytes(tb, enc_dim, layer_out_dims, out_dim, param_bytes, w_itemsize):
    """Rough per-step live-VMEM estimate used to clamp the batch tile."""
    io = 2 * tb * (enc_dim + out_dim) * 4                 # double-buffered x / out tiles (f32)
    acts_f32 = tb * sum(layer_out_dims) * 4               # f32 intermediates
    acts_lo = tb * (enc_dim + sum(layer_out_dims[:-1])) * w_itemsize  # operands fed to MXU
    return io + 2 * param_bytes + acts_f32 + acts_lo


def decoder1d_forward_transposed(x_t, prepared_params, n_circular, block_cols=4096):
    """Core entry.  x_t: (enc_dim, B) f32 -> (n_circular + n_linear, B) f32."""
    w0, b0, w1, b1, w2, b2, w3p, b3p = prepared_params
    enc_dim, batch = x_t.shape
    total_out = w3p.shape[0]
    out_dim = total_out - n_circular            # n_circular + n_linear
    layer_out_dims = (w0.shape[0], w1.shape[0], w2.shape[0], total_out)
    param_bytes = sum(int(a.size) * a.dtype.itemsize
                      for a in (w0, b0, w1, b1, w2, b2, w3p, b3p))
    w_itemsize = w0.dtype.itemsize

    # ---- batch (lane) tile size ----
    # Big tiles amortize the ~0.35us per-grid-step overhead.  The lane dim of
    # a block must be a multiple of 128 unless it equals the full batch.
    tb = min(block_cols, batch)
    if tb != batch:
        tb = max(128, (tb // 128) * 128)
    # v7x has 2 TensorCores: make sure the (parallel) batch grid has >= 2 steps
    # so both cores get work.  Costs one extra tiny step on 1-TC chips.
    if batch > 128 and pl.cdiv(batch, tb) < 2:
        tb = _round_up(pl.cdiv(batch, 2), 128)
    # Budget the double-buffered tiles + resident params against VMEM
    # (64 MiB physical on v7x, 16 MiB scoped default on v5e).
    while tb > 128 and _vmem_bytes(tb, enc_dim, layer_out_dims, out_dim,
                                   param_bytes, w_itemsize) > _VMEM_TILE_BUDGET:
        tb = max(128, ((tb // 2) // 128) * 128)

    grid = (pl.cdiv(batch, tb),)

    kernel = functools.partial(decoder1d_kernel, n_circular=n_circular)

    def resident(arr):
        # Same block every grid step -> stays VMEM-resident, no re-DMA.
        # TODO(synk): when hidden dims grow, add pipeline_mode=pl.Buffered(1)
        # here to drop the pointless second buffer for these constant operands.
        return pl.BlockSpec(arr.shape, lambda i: (0, 0))

    # Advisory cost so XLA schedules this call sensibly (arctan2 lowers to more
    # than one transcendental; advisory only).
    weight_elems = sum(int(w.shape[0] * w.shape[1]) for w in (w0, w1, w2, w3p))
    flops = 2 * batch * weight_elems
    transcendentals = batch * (sum(layer_out_dims[:-1]) + n_circular)
    bytes_accessed = int(x_t.size) * 4 + param_bytes + batch * out_dim * 4
    cost = pl.CostEstimate(flops=int(flops),
                           transcendentals=int(transcendentals),
                           bytes_accessed=int(bytes_accessed))

    vmem_limit = max(_MIN_VMEM_LIMIT,
                     min(int(1.5 * _vmem_bytes(tb, enc_dim, layer_out_dims,
                                               out_dim, param_bytes, w_itemsize)),
                         _MAX_VMEM_LIMIT))

    return pl.pallas_call(
        kernel,
        out_shape=jax.ShapeDtypeStruct((out_dim, batch), jnp.float32),
        grid_spec=pltpu.PrefetchScalarGridSpec(
            num_scalar_prefetch=0,
            grid=grid,
            in_specs=[
                pl.BlockSpec((enc_dim, tb), lambda i: (0, i)),  # x: batch-column tiled
                resident(w0), resident(b0),
                resident(w1), resident(b1),
                resident(w2), resident(b2),
                resident(w3p), resident(b3p),
            ],
            out_specs=pl.BlockSpec((out_dim, tb), lambda i: (0, i)),
        ),
        compiler_params=pltpu.CompilerParams(
            # Batch axis is embarrassingly parallel -> megacore sharding on v7x.
            dimension_semantics=("parallel",),
            vmem_limit_bytes=vmem_limit,
        ),
        cost_estimate=cost,
    )(x_t, w0, b0, w1, b1, w2, b2, w3p, b3p)


def decoder1d_forward(x, prepared_params, n_circular, block_cols=4096):
    """Drop-in (batch, features) API mirroring the torch module.

    A single up-front transpose puts batch on the TPU lane axis; the inverse
    transpose on the (out_dim, B) result is cheap.  Callers that can supply
    (enc_dim, B) directly should use decoder1d_forward_transposed.
    """
    out_t = decoder1d_forward_transposed(x.T, prepared_params, n_circular,
                                         block_cols=block_cols)
    return out_t.T


# --------------------------- parameter creation ------------------------------
def init_decoder1d_params(key, encoded_dim, n_circular, n_linear,
                          hidden_dim, n_hidden_layers):
    """Deterministic init mirroring wide_n_deep in PyTorch layout (out, in).

    Layers: Linear(enc, h/2) -> Tanh -> [Linear(h/2, h) -> Tanh]*n
            -> Linear(h, h/2) -> Tanh -> Linear(h/2, out)
    """
    assert n_hidden_layers == 1, "this script instantiates the default n_hidden_layers=1"
    half = hidden_dim // 2
    out_dim = 2 * n_circular + n_linear
    dims = [(encoded_dim, half), (half, hidden_dim), (hidden_dim, half), (half, out_dim)]

    params = []
    for fan_in, fan_out in dims:
        kw, kb, key = jax.random.split(key, 3)
        bound = 1.0 / jnp.sqrt(fan_in)  # matches nn.Linear default init range
        w = jax.random.uniform(kw, (fan_out, fan_in), jnp.float32, -bound, bound)
        b = jax.random.uniform(kb, (fan_out,), jnp.float32, -bound, bound)
        params += [w, b]
    return tuple(params)


# --------------------------- pure-JAX references ------------------------------
def decoder1d_reference(x, params, n_circular):
    """f32 reference mirroring the PyTorch module exactly (torch layout)."""
    w0, b0, w1, b1, w2, b2, w3, b3 = params
    h = jnp.tanh(x @ w0.T + b0)
    h = jnp.tanh(h @ w1.T + b1)
    h = jnp.tanh(h @ w2.T + b2)
    enc = h @ w3.T + b3
    nc2 = 2 * n_circular
    circ = enc[:, :nc2].reshape(x.shape[0], -1, 2)
    return jnp.concatenate(
        [jnp.arctan2(circ[..., 1], circ[..., 0]), enc[:, nc2:]], axis=-1)


def decoder1d_reference_prepared(x, prepared_params, n_circular):
    """Mirrors the kernel's exact math (low-precision matmul operands, f32
    accumulation) in plain jnp, for tight comparison against the bf16 path."""
    w0, b0, w1, b1, w2, b2, w3p, b3p = prepared_params
    cdt = w0.dtype
    h = x.T.astype(cdt)
    h = jnp.tanh(jnp.dot(w0, h, preferred_element_type=jnp.float32) + b0)
    h = jnp.tanh(jnp.dot(w1, h.astype(cdt), preferred_element_type=jnp.float32) + b1)
    h = jnp.tanh(jnp.dot(w2, h.astype(cdt), preferred_element_type=jnp.float32) + b2)
    enc = jnp.dot(w3p, h.astype(cdt), preferred_element_type=jnp.float32) + b3p
    nc = n_circular
    ang = jnp.arctan2(enc[nc:2 * nc, :], enc[:nc, :])
    return jnp.concatenate([ang, enc[2 * nc:, :]], axis=0).T


def _assert_close_decoded(out, ref, n_circular, atol, what):
    """Compare decoded outputs; circular columns compared modulo 2*pi so a
    benign atan2 branch-cut flip near +-pi cannot fail the test."""
    diff = out - ref
    circ = (diff[:, :n_circular] + jnp.pi) % (2 * jnp.pi) - jnp.pi
    diff = diff.at[:, :n_circular].set(circ)
    max_err = float(jnp.max(jnp.abs(diff)))
    assert max_err < atol, f"{what}: max abs diff {max_err} >= {atol}"


# ----------------------------------- main ------------------------------------
if __name__ == "__main__":
    # Small, module-consistent shapes (hidden_layer_dimension shrunk from the
    # module default of 1000 to keep the example tiny).
    encoded_dimension = 32
    n_circular_dimensions = 2
    n_linear_dimensions = 4
    hidden_layer_dimension = 64
    n_hidden_layers = 1
    out_dimension = n_circular_dimensions + n_linear_dimensions

    key = jax.random.PRNGKey(0)
    kx1, kx2, kp = jax.random.split(key, 3)
    params = init_decoder1d_params(kp, encoded_dimension, n_circular_dimensions,
                                   n_linear_dimensions, hidden_layer_dimension,
                                   n_hidden_layers)

    fwd = jax.jit(decoder1d_forward, static_argnames=("n_circular", "block_cols"))

    # --- 1) tiny batch, f32 weights: check vs the torch-style f32 reference ---
    batch1 = 8
    x1 = jax.random.normal(kx1, (batch1, encoded_dimension), jnp.float32)
    prepared_f32 = prepare_decoder1d_params(params, n_circular_dimensions,
                                            weights_dtype=jnp.float32)
    out1 = jax.block_until_ready(fwd(x1, prepared_f32, n_circular=n_circular_dimensions))
    ref1 = decoder1d_reference(x1, params, n_circular_dimensions)
    assert out1.shape == (batch1, out_dimension)
    _assert_close_decoded(out1, ref1, n_circular_dimensions, 1e-3, "f32 single tile")

    # --- 2) bf16 weights (default) with a >=2-step lane-tiled batch grid ---
    batch2 = 384   # default block_cols -> auto-split into 2 tiles (256 + 128)
    x2 = jax.random.normal(kx2, (batch2, encoded_dimension), jnp.float32)
    prepared = prepare_decoder1d_params(params, n_circular_dimensions)
    out2 = jax.block_until_ready(fwd(x2, prepared, n_circular=n_circular_dimensions))
    ref2 = decoder1d_reference_prepared(x2, prepared, n_circular_dimensions)
    assert out2.shape == (batch2, out_dimension)
    _assert_close_decoded(out2, ref2, n_circular_dimensions, 1e-3, "bf16 2-step grid")

    # --- 3) same inputs, explicitly small tiles: 3 pipelined grid steps ---
    out3 = jax.block_until_ready(
        fwd(x2, prepared, n_circular=n_circular_dimensions, block_cols=128))
    _assert_close_decoded(out3, ref2, n_circular_dimensions, 1e-3, "bf16 3-step grid")

    print("KERNEL_OK")
</pallas_src>

<mosaic_0001>
module attributes {stable_mosaic.version = 11 : i64} {
  func.func @decoder1d_kernel(%arg0: i32, %arg1: memref<32x8xf32, #tpu.memory_space<vmem>>, %arg2: memref<32x32xf32, #tpu.memory_space<vmem>>, %arg3: memref<32x1xf32, #tpu.memory_space<vmem>>, %arg4: memref<64x32xf32, #tpu.memory_space<vmem>>, %arg5: memref<64x1xf32, #tpu.memory_space<vmem>>, %arg6: memref<32x64xf32, #tpu.memory_space<vmem>>, %arg7: memref<32x1xf32, #tpu.memory_space<vmem>>, %arg8: memref<8x32xf32, #tpu.memory_space<vmem>>, %arg9: memref<8x1xf32, #tpu.memory_space<vmem>>, %arg10: memref<6x8xf32, #tpu.memory_space<vmem>>) attributes {dimension_semantics = [#tpu.dimension_semantics<parallel>], iteration_bounds = array<i64: 1>, scalar_prefetch = 0 : i64, scratch_operands = 0 : i64, tpu.core_type = #tpu.core_type<tc>, window_params = [{transform_indices = @transform_0, window_bounds = array<i64: 32, 8>}, {pipeline_mode = #tpu.pipeline_mode<synchronous>, transform_indices = @transform_1, window_bounds = array<i64: 32, 32>}, {pipeline_mode = #tpu.pipeline_mode<synchronous>, transform_indices = @transform_2, window_bounds = array<i64: 32, 1>}, {pipeline_mode = #tpu.pipeline_mode<synchronous>, transform_indices = @transform_3, window_bounds = array<i64: 64, 32>}, {pipeline_mode = #tpu.pipeline_mode<synchronous>, transform_indices = @transform_4, window_bounds = array<i64: 64, 1>}, {pipeline_mode = #tpu.pipeline_mode<synchronous>, transform_indices = @transform_5, window_bounds = array<i64: 32, 64>}, {pipeline_mode = #tpu.pipeline_mode<synchronous>, transform_indices = @transform_6, window_bounds = array<i64: 32, 1>}, {pipeline_mode = #tpu.pipeline_mode<synchronous>, transform_indices = @transform_7, window_bounds = array<i64: 8, 32>}, {pipeline_mode = #tpu.pipeline_mode<synchronous>, transform_indices = @transform_8, window_bounds = array<i64: 8, 1>}, {transform_indices = @transform_9, window_bounds = array<i64: 6, 8>}]} {
    %c0 = arith.constant 0 : index
    %c0_0 = arith.constant 0 : index
    %0 = vector.load %arg1[%c0, %c0_0] : memref<32x8xf32, #tpu.memory_space<vmem>>, vector<32x8xf32>
    %c0_1 = arith.constant 0 : index
    %c0_2 = arith.constant 0 : index
    %1 = vector.load %arg2[%c0_1, %c0_2] : memref<32x32xf32, #tpu.memory_space<vmem>>, vector<32x32xf32>
    %cst = arith.constant dense<0.000000e+00> : vector<32x8xf32>
    %2 = tpu.matmul %1, %0, %cst {dimension_numbers = #tpu.dot_dimension_numbers<[1], [0], [0], [1], [0, 0, 1, 1], [], []>} : vector<32x32xf32>, vector<32x8xf32>, vector<32x8xf32> -> vector<32x8xf32>
    %c0_3 = arith.constant 0 : index
    %c0_4 = arith.constant 0 : index
    %3 = vector.load %arg3[%c0_3, %c0_4] : memref<32x1xf32, #tpu.memory_space<vmem>>, vector<32x1xf32>
    %4 = vector.broadcast %3 : vector<32x1xf32> to vector<32x8xf32>
    %5 = arith.addf %2, %4 : vector<32x8xf32>
    %6 = math.tanh %5 : vector<32x8xf32>
    %c0_5 = arith.constant 0 : index
    %c0_6 = arith.constant 0 : index
    %7 = vector.load %arg4[%c0_5, %c0_6] : memref<64x32xf32, #tpu.memory_space<vmem>>, vector<64x32xf32>
    %cst_7 = arith.constant dense<0.000000e+00> : vector<64x8xf32>
    %8 = tpu.matmul %7, %6, %cst_7 {dimension_numbers = #tpu.dot_dimension_numbers<[1], [0], [0], [1], [0, 0, 1, 1], [], []>} : vector<64x32xf32>, vector<32x8xf32>, vector<64x8xf32> -> vector<64x8xf32>
    %c0_8 = arith.constant 0 : index
    %c0_9 = arith.constant 0 : index
    %9 = vector.load %arg5[%c0_8, %c0_9] : memref<64x1xf32, #tpu.memory_space<vmem>>, vector<64x1xf32>
    %10 = vector.broadcast %9 : vector<64x1xf32> to vector<64x8xf32>
    %11 = arith.addf %8, %10 : vector<64x8xf32>
    %12 = math.tanh %11 : vector<64x8xf32>
    %c0_10 = arith.constant 0 : index
    %c0_11 = arith.constant 0 : index
    %13 = vector.load %arg6[%c0_10, %c0_11] : memref<32x64xf32, #tpu.memory_space<vmem>>, vector<32x64xf32>
    %cst_12 = arith.constant dense<0.000000e+00> : vector<32x8xf32>
    %14 = tpu.matmul %13, %12, %cst_12 {dimension_numbers = #tpu.dot_dimension_numbers<[1], [0], [0], [1], [0, 0, 1, 1], [], []>} : vector<32x64xf32>, vector<64x8xf32>, vector<32x8xf32> -> vector<32x8xf32>
    %c0_13 = arith.constant 0 : index
    %c0_14 = arith.constant 0 : index
    %15 = vector.load %arg7[%c0_13, %c0_14] : memref<32x1xf32, #tpu.memory_space<vmem>>, vector<32x1xf32>
    %16 = vector.broadcast %15 : vector<32x1xf32> to vector<32x8xf32>
    %17 = arith.addf %14, %16 : vector<32x8xf32>
    %18 = math.tanh %17 : vector<32x8xf32>
    %c0_15 = arith.constant 0 : index
    %c0_16 = arith.constant 0 : index
    %19 = vector.load %arg8[%c0_15, %c0_16] : memref<8x32xf32, #tpu.memory_space<vmem>>, vector<8x32xf32>
    %cst_17 = arith.constant dense<0.000000e+00> : vector<8x8xf32>
    %20 = tpu.matmul %19, %18, %cst_17 {dimension_numbers = #tpu.dot_dimension_numbers<[1], [0], [0], [1], [0, 0, 1, 1], [], []>} : vector<8x32xf32>, vector<32x8xf32>, vector<8x8xf32> -> vector<8x8xf32>
    %c0_18 = arith.constant 0 : index
    %c0_19 = arith.constant 0 : index
    %21 = vector.load %arg9[%c0_18, %c0_19] : memref<8x1xf32, #tpu.memory_space<vmem>>, vector<8x1xf32>
    %22 = vector.broadcast %21 : vector<8x1xf32> to vector<8x8xf32>
    %23 = arith.addf %20, %22 : vector<8x8xf32>
    %24 = vector.extract_strided_slice %23 {offsets = [0, 0], sizes = [2, 8], strides = [1, 1]} : vector<8x8xf32> to vector<2x8xf32>
    %25 = vector.extract_strided_slice %23 {offsets = [2, 0], sizes = [2, 8], strides = [1, 1]} : vector<8x8xf32> to vector<2x8xf32>
    %26 = vector.extract_strided_slice %23 {offsets = [4, 0], sizes = [4, 8], strides = [1, 1]} : vector<8x8xf32> to vector<4x8xf32>
    %27 = math.atan2 %25, %24 : vector<2x8xf32>
    %c0_20 = arith.constant 0 : index
    %c0_21 = arith.constant 0 : index
    %28 = vector.load %arg10[%c0_20, %c0_21] : memref<6x8xf32, #tpu.memory_space<vmem>>, vector<2x8xf32>
    tpu.vector_store %arg10[%c0_20, %c0_21], %27 {strides = array<i32>} : memref<6x8xf32, #tpu.memory_space<vmem>>, vector<2x8xf32>,
    %c2 = arith.constant 2 : index
    %c0_22 = arith.constant 0 : index
    %29 = vector.load %arg10[%c2, %c0_22] : memref<6x8xf32, #tpu.memory_space<vmem>>, vector<4x8xf32>
    tpu.vector_store %arg10[%c2, %c0_22], %26 {strides = array<i32>} : memref<6x8xf32, #tpu.memory_space<vmem>>, vector<4x8xf32>,
    return
  }
  func.func @transform_0(%arg0: i32) -> (i32, i32) {
    %c0_i32 = arith.constant 0 : i32
    %c0_i32_0 = arith.constant 0 : i32
    return %c0_i32, %arg0 : i32, i32
  }
  func.func @transform_1(%arg0: i32) -> (i32, i32) {
    %c0_i32 = arith.constant 0 : i32
    %c0_i32_0 = arith.constant 0 : i32
    %c0_i32_1 = arith.constant 0 : i32
    return %c0_i32, %c0_i32_0 : i32, i32
  }
  func.func @transform_2(%arg0: i32) -> (i32, i32) {
    %c0_i32 = arith.constant 0 : i32
    %c0_i32_0 = arith.constant 0 : i32
    %c0_i32_1 = arith.constant 0 : i32
    return %c0_i32, %c0_i32_0 : i32, i32
  }
  func.func @transform_3(%arg0: i32) -> (i32, i32) {
    %c0_i32 = arith.constant 0 : i32
    %c0_i32_0 = arith.constant 0 : i32
    %c0_i32_1 = arith.constant 0 : i32
    return %c0_i32, %c0_i32_0 : i32, i32
  }
  func.func @transform_4(%arg0: i32) -> (i32, i32) {
    %c0_i32 = arith.constant 0 : i32
    %c0_i32_0 = arith.constant 0 : i32
    %c0_i32_1 = arith.constant 0 : i32
    return %c0_i32, %c0_i32_0 : i32, i32
  }
  func.func @transform_5(%arg0: i32) -> (i32, i32) {
    %c0_i32 = arith.constant 0 : i32
    %c0_i32_0 = arith.constant 0 : i32
    %c0_i32_1 = arith.constant 0 : i32
    return %c0_i32, %c0_i32_0 : i32, i32
  }
  func.func @transform_6(%arg0: i32) -> (i32, i32) {
    %c0_i32 = arith.constant 0 : i32
    %c0_i32_0 = arith.constant 0 : i32
    %c0_i32_1 = arith.constant 0 : i32
    return %c0_i32, %c0_i32_0 : i32, i32
  }
  func.func @transform_7(%arg0: i32) -> (i32, i32) {
    %c0_i32 = arith.constant 0 : i32
    %c0_i32_0 = arith.constant 0 : i32
    %c0_i32_1 = arith.constant 0 : i32
    return %c0_i32, %c0_i32_0 : i32, i32
  }
  func.func @transform_8(%arg0: i32) -> (i32, i32) {
    %c0_i32 = arith.constant 0 : i32
    %c0_i32_0 = arith.constant 0 : i32
    %c0_i32_1 = arith.constant 0 : i32
    return %c0_i32, %c0_i32_0 : i32, i32
  }
  func.func @transform_9(%arg0: i32) -> (i32, i32) {
    %c0_i32 = arith.constant 0 : i32
    %c0_i32_0 = arith.constant 0 : i32
    return %c0_i32, %arg0 : i32, i32
  }
}

</mosaic_0001>

<bundles_post_ra>
// kernel: decoder1d_forward.1
= control target key start
LH: loop header
LB: loop body
LE: loop exit
PB: predicated region body
PF: predicated region fallthrough
CT: control target
= control target key end

     0   :  { %vm64_vm0 = vcmask 261120   ;;  %v827_v3 = vmov 0   ;;  %vm387_vm1 = vcmask 523264   ;;  %vm829_vm2 = vmmov 0   ;;  %s1021_s0 = inlined_call_operand.vmem [shape: f32[32,8], index: 0, kind: input, shape index: {}]   ;;  %s1022_s1 = inlined_call_operand.vmem [shape: f32[32,32], index: 1, kind: input, shape index: {}]   ;;  %s1023_s2 = inlined_call_operand.vmem [shape: f32[32,1], index: 2, kind: input, shape index: {}]   ;;  %s1024_s4 = inlined_call_operand.vmem [shape: f32[64,1], index: 4, kind: input, shape index: {}]   ;;  %s1025_s6 = inlined_call_operand.vmem [shape: f32[32,1], index: 6, kind: input, shape index: {}]   ;;  %s1026_s8 = inlined_call_operand.vmem [shape: f32[8,1], index: 8, kind: input, shape index: {}]   ;;  %s1027_s3 = inlined_call_operand.vmem [shape: f32[64,32], index: 3, kind: input, shape index: {}]   ;;  %s1028_s5 = inlined_call_operand.vmem [shape: f32[32,64], index: 5, kind: input, shape index: {}]   ;;  %s1029_s7 = inlined_call_operand.vmem [shape: f32[8,32], index: 7, kind: input, shape index: {}]   ;;  %s1030_s9 = inlined_call_operand.vmem [shape: f32[6,8], index: 9, kind: output, shape index: {}]  }
   0x1   :  { %v32_v0 = vld [vmem:[%s1021_s0] sm:$0xff]  ;;  %v33_v1 = vld [vmem:[%s1021_s0 + $0x8] sm:$0xff]  ;;  %v34_v2 = vld [vmem:[%s1021_s0 + $0x10] sm:$0xff]  ;;  %791 = vset.pattern.permute.xlu0 %v827_v3  ;;  %792 = vset.pattern.permute.xlu1 %v827_v3  ;;  %vm621_vm3 = vcmask 64516   ;;  %vm619_vm14 = vcmask 60418  }
   0x2   :  { %v748_v4 = vpack.c.bf16 %v33_v1, %v32_v0  ;;  %v35_v5 = vld [vmem:[%s1021_s0 + $0x18] sm:$0xff]  ;;  %v36_v6 = vld [vmem:[%s1022_s1] sm:$0xff]  ;;  %v42_v9 = vld [vmem:[%s1023_s2 + $0x10] sm:$0xff] }
   0x3   :  { %v752_v7 = vpack.c.bf16 %v35_v5, %v34_v2  ;;  %689 = vmatprep.mubr.msk.f32.mxu0 %vm64_vm0, %v36_v6  ;;  %v40_v8 = vld [vmem:[%s1023_s2] sm:$0xff]  ;;  %v41_v10 = vld [vmem:[%s1023_s2 + $0x8] sm:$0xff]  ;;  %56 = vperm.xlu1 %792, %v42_v9   ;;  %v43_v11 = vld [vmem:[%s1023_s2 + $0x18] sm:$0xff] }
   0x4   :  { %749 = vmatprep.subr.bf16.mxu0 %v748_v4  ;;  %46 = vperm.xlu0 %791, %v40_v8   ;;  %v37_v12 = vld [vmem:[%s1022_s1 + $0x8] sm:$0xff]  ;;  %v174_v13 = vld [vmem:[%s1024_s4] sm:$0xff]  ;;  %v38_v14 = vld [vmem:[%s1022_s1 + $0x10] sm:$0xff] }
   0x5   :  { %751 = vmatpush3.bf16.msra.mxu0 %v748_v4  ;;  %v175_v15 = vld [vmem:[%s1024_s4 + $0x8] sm:$0xff]  ;;  %v39_v16 = vld [vmem:[%s1022_s1 + $0x18] sm:$0xff]  ;;  %v176_v17 = vld [vmem:[%s1024_s4 + $0x10] sm:$0xff] }
   0x6   :  { %753 = vmatprep.subr.bf16.mxu0 %v752_v7  ;;  %v177_v18 = vld [vmem:[%s1024_s4 + $0x18] sm:$0xff]  ;;  %v178_v19 = vld [vmem:[%s1024_s4 + $0x20] sm:$0xff]  ;;  %v179_v20 = vld [vmem:[%s1024_s4 + $0x28] sm:$0xff] }
   0x7   :  { %61 = vperm.xlu1 %792, %v43_v11   ;;  %v180_v21 = vld [vmem:[%s1024_s4 + $0x30] sm:$0xff]  ;;  %v181_v22 = vld [vmem:[%s1024_s4 + $0x38] sm:$0xff]  ;;  %v363_v23 = vld [vmem:[%s1025_s6] sm:$0xff] }
   0x8   :  { %51 = vperm.xlu0 %791, %v41_v10   ;;  %v364_v24 = vld [vmem:[%s1025_s6 + $0x8] sm:$0xff]  ;;  %v365_v25 = vld [vmem:[%s1025_s6 + $0x10] sm:$0xff]  ;;  %v366_v26 = vld [vmem:[%s1025_s6 + $0x18] sm:$0xff] }
   0x9   :  { %755 = vmatpush3.bf16.msra.mxu0 %v752_v7  ;;  %v490_v27 = vld [vmem:[%s1026_s8] sm:$0xff]  ;;  %v167_v47 = vld [vmem:[%s1027_s3 + $0x8] sm:$0xff]  ;;  %v168_v48 = vld [vmem:[%s1027_s3 + $0x10] sm:$0xff] }
   0xa   :  { %v166_v28 = vld [vmem:[%s1027_s3] sm:$0xff]  ;;  %v169_v49 = vld [vmem:[%s1027_s3 + $0x18] sm:$0xff]  ;;  %v171_v51 = vld [vmem:[%s1027_s3 + $0x28] sm:$0xff] }
   0xb   :  { %189 = vperm.xlu1 %792, %v175_v15   ;;  %703 = vmatprep.mubr.msk.f32.mxu1 %vm64_vm0, %v166_v28  ;;  %v170_v50 = vld [vmem:[%s1027_s3 + $0x20] sm:$0xff]  ;;  %v172_v52 = vld [vmem:[%s1027_s3 + $0x30] sm:$0xff]  ;;  %v173_v53 = vld [vmem:[%s1027_s3 + $0x38] sm:$0xff] }
   0xc   :  { %690 = vmatmul.mubr.msk.f32.vlgmr.msra.gmra.mrb[0].mxu0 %vm64_vm0, %v37_v12  ;;  %184 = vperm.xlu0 %791, %v174_v13   ;;  %v359_v54 = vld [vmem:[%s1028_s5] sm:$0xff]  ;;  %v361_v28 = vld [vmem:[%s1028_s5 + $0x10] sm:$0xff] }
   0xd   :  { %692 = vmatprep.mubr.msk.f32.mxu0 %vm64_vm0, %v38_v14 }
   0xf   :  { %199 = vperm.xlu1 %792, %v177_v18  }
  0x10   :  { %693 = vmatmul.mubr.msk.f32.gmra.mrb[2].mxu0 %vm64_vm0, %v39_v16  ;;  %194 = vperm.xlu0 %791, %v176_v17  }
  0x11   :  { %731 = vmatprep.mubr.msk.f32.mxu0 %vm387_vm1, %v359_v54 }
  0x13   :  { %209 = vperm.xlu1 %792, %v179_v20  }
  0x14   :  { %204 = vperm.xlu0 %791, %v178_v19  }
  0x17   :  { %219 = vperm.xlu1 %792, %v181_v22  }
  0x18   :  { %214 = vperm.xlu0 %791, %v180_v21  }
  0x1b   :  { %374 = vperm.xlu1 %792, %v364_v24  }
  0x1c   :  { %369 = vperm.xlu0 %791, %v363_v23  }
  0x1f   :  { %384 = vperm.xlu1 %792, %v366_v26  }
  0x20   :  { %379 = vperm.xlu0 %791, %v365_v25  }
  0x24   :  { %493 = vperm.xlu0 %791, %v490_v27   ;;  %v360_v27 = vld [vmem:[%s1028_s5 + $0x8] sm:$0xff] }
  0x82   :  { %v57_v30 = vpop.permute.xlu1 %56 }
  0x83   :  { %v47_v29 = vpop.permute.xlu0 %46 }
  0x86   :  { %v62_v36 = vpop.permute.xlu1 %61 }
  0x87   :  { %v52_v31 = vpop.permute.xlu0 %51 }
  0x8a   :  { %v190_v55 = vpop.permute.xlu1 %189 }
  0x8b   :  { %v185_v56 = vpop.permute.xlu0 %184 }
  0x8e   :  { %v200_v57 = vpop.permute.xlu1 %199 }
  0x8f   :  { %v195_v59 = vpop.permute.xlu0 %194 }
  0x92   :  { %v210_v2 = vpop.permute.xlu1 %209 }
  0x93   :  { %v205_v4 = vpop.permute.xlu0 %204 }
  0x96   :  { %v220_v9 = vpop.permute.xlu1 %219 }
  0x97   :  { %v215_v12 = vpop.permute.xlu0 %214 }
  0xdf   :  { %v691_v32 = vpop.f32.mrb[0].mxu0 }
  0xe0   :  { %v149_v33 = vadd.f32 %v691_v32, %v52_v31  ;;  %v143_v34 = vpop.f32.mrb[1].mxu0  ;;  %v830_v31 = vmov 0.0   ;;  %v375_v32 = vpop.permute.xlu1 %374 }
  0xe1   :  { %v144_v35 = vadd.f32 %v143_v34, %v47_v29  ;;  %v362_v29 = vld [vmem:[%s1028_s5 + $0x18] sm:$0xff] }
  0xe2   :  { %793 = vtanh.f32 %v149_v33  ;;  %v370_v33 = vpop.permute.xlu0 %369 }
  0xe3   :  { %795 = vtanh.f32 %v144_v35  ;;  %v694_v37 = vpop.f32.mrb[2].mxu0 }
  0xe4   :  { %v159_v38 = vadd.f32 %v694_v37, %v62_v36  ;;  %v153_v39 = vpop.f32.mrb[3].mxu0 }
  0xe5   :  { %v154_v40 = vadd.f32 %v153_v39, %v57_v30  ;;  %v828_v30 = vmov 0.0|0.0  }
  0xe6   :  { %797 = vtanh.f32 %v159_v38  ;;  %v385_v38 = vpop.permute.xlu1 %384 }
  0xe7   :  { %799 = vtanh.f32 %v154_v40  ;;  %v380_v40 = vpop.permute.xlu0 %379 }
  0xec   :  { %v794_v41 = vpop.eup %793 }
  0xed   :  { %v796_v42 = vpop.eup %795 }
  0xee   :  { %v756_v43 = vpack.c.bf16 %v794_v41, %v796_v42 }
  0xf0   :  { %v798_v44 = vpop.eup %797  ;;  %757 = vmatprep.subr.bf16.mxu1 %v756_v43 }
  0xf1   :  { %v800_v45 = vpop.eup %799  ;;  %759 = vmatpush3.bf16.msra.mxu1 %v756_v43 }
  0xf2   :  { %v760_v46 = vpack.c.bf16 %v798_v44, %v800_v45 }
  0xf4   :  { %761 = vmatprep.subr.bf16.mxu1 %v760_v46 }
  0xf5   :  { %763 = vmatpush3.bf16.msra.mxu1 %v760_v46 }
  0xf6   :  { %780 = vmatprep.subr.bf16.mxu1 %v828_v30 }
  0xf8   :  { %704 = vmatmul.mubr.msk.f32.vlgmr.msra.gmra.mrb[0].mxu1 %vm64_vm0, %v167_v47 }
  0xf9   :  { %706 = vmatprep.mubr.msk.f32.mxu1 %vm64_vm0, %v168_v48 }
  0xfc   :  { %707 = vmatmul.mubr.msk.f32.gmra.mrb[2].mxu1 %vm64_vm0, %v169_v49 }
  0xfd   :  { %709 = vmatprep.mubr.msk.f32.mxu1 %vm64_vm0, %v170_v50  ;;  %v489_v50 = vld [vmem:[%s1029_s7] sm:$0xff] }
 0x100   :  { %710 = vmatmul.mubr.msk.f32.gmra.mrb[4].mxu1 %vm64_vm0, %v171_v51  ;;  %v494_v51 = vpop.permute.xlu0 %493 }
 0x101   :  { %712 = vmatprep.mubr.msk.f32.mxu1 %vm64_vm0, %v172_v52 }
 0x104   :  { %713 = vmatmul.mubr.msk.f32.gmra.mrb[6].mxu1 %vm64_vm0, %v173_v53 }
 0x105   :  { %745 = vmatprep.mubr.msk.f32.mxu1 %vm829_vm2, %v830_v31 }
 0x1cb   :  { %v705_v58 = vpop.f32.mrb[0].mxu1 }
 0x1cc   :  { %v318_v60 = vadd.f32 %v705_v58, %v190_v55  ;;  %v312_v61 = vpop.f32.mrb[1].mxu1 }
 0x1cd   :  { %v313_v62 = vadd.f32 %v312_v61, %v185_v56 }
 0x1ce   :  { %801 = vtanh.f32 %v318_v60 }
 0x1cf   :  { %803 = vtanh.f32 %v313_v62  ;;  %v708_v63 = vpop.f32.mrb[2].mxu1 }
 0x1d0   :  { %v328_v0 = vadd.f32 %v708_v63, %v200_v57  ;;  %v322_v1 = vpop.f32.mrb[3].mxu1 }
 0x1d1   :  { %v323_v3 = vadd.f32 %v322_v1, %v195_v59 }
 0x1d2   :  { %805 = vtanh.f32 %v328_v0 }
 0x1d3   :  { %807 = vtanh.f32 %v323_v3  ;;  %v711_v5 = vpop.f32.mrb[4].mxu1 }
 0x1d4   :  { %v338_v6 = vadd.f32 %v711_v5, %v210_v2  ;;  %v332_v7 = vpop.f32.mrb[5].mxu1 }
 0x1d5   :  { %v333_v8 = vadd.f32 %v332_v7, %v205_v4 }
 0x1d6   :  { %809 = vtanh.f32 %v338_v6 }
 0x1d7   :  { %811 = vtanh.f32 %v333_v8  ;;  %v714_v10 = vpop.f32.mrb[6].mxu1 }
 0x1d8   :  { %v802_v11 = vpop.eup %801  ;;  %v348_v13 = vadd.f32 %v714_v10, %v220_v9  ;;  %v342_v14 = vpop.f32.mrb[7].mxu1 }
 0x1d9   :  { %v804_v15 = vpop.eup %803  ;;  %v343_v16 = vadd.f32 %v342_v14, %v215_v12 }
 0x1da   :  { %813 = vtanh.f32 %v348_v13  ;;  %v764_v17 = vpack.c.bf16 %v802_v11, %v804_v15 }
 0x1db   :  { %815 = vtanh.f32 %v343_v16 }
 0x1dc   :  { %v806_v18 = vpop.eup %805  ;;  %765 = vmatprep.subr.bf16.mxu0 %v764_v17 }
 0x1dd   :  { %v808_v19 = vpop.eup %807  ;;  %767 = vmatpush3.bf16.msra.mxu0 %v764_v17 }
 0x1de   :  { %v768_v20 = vpack.c.bf16 %v806_v18, %v808_v19 }
 0x1e0   :  { %v810_v21 = vpop.eup %809  ;;  %769 = vmatprep.subr.bf16.mxu0 %v768_v20 }
 0x1e1   :  { %v812_v22 = vpop.eup %811  ;;  %771 = vmatpush3.bf16.msra.mxu0 %v768_v20 }
 0x1e2   :  { %v772_v23 = vpack.c.bf16 %v810_v21, %v812_v22 }
 0x1e4   :  { %v814_v24 = vpop.eup %813  ;;  %773 = vmatprep.subr.bf16.mxu0 %v772_v23 }
 0x1e5   :  { %v816_v25 = vpop.eup %815  ;;  %775 = vmatpush3.bf16.msra.mxu0 %v772_v23  ;;  %v831_v23 = vmov 0.7853982  }
 0x1e6   :  { %v776_v26 = vpack.c.bf16 %v814_v24, %v816_v25 }
 0x1e8   :  { %777 = vmatprep.subr.bf16.mxu0 %v776_v26 }
 0x1e9   :  { %779 = vmatpush3.bf16.msra.mxu0 %v776_v26 }
 0x1ec   :  { %732 = vmatmul.mubr.msk.f32.vlgmr.msra.gmra.mrb[4].mxu0 %vm387_vm1, %v360_v27 }
 0x1ed   :  { %734 = vmatprep.mubr.msk.f32.mxu0 %vm387_vm1, %v361_v28 }
 0x1f0   :  { %735 = vmatmul.mubr.msk.f32.gmra.mrb[6].mxu0 %vm387_vm1, %v362_v29 }
 0x2bf   :  { %v733_v34 = vpop.f32.mrb[4].mxu0 }
 0x2c0   :  { %v472_v35 = vadd.f32 %v733_v34, %v375_v32  ;;  %v466_v36 = vpop.f32.mrb[5].mxu0 }
 0x2c1   :  { %v467_v37 = vadd.f32 %v466_v36, %v370_v33 }
 0x2c2   :  { %817 = vtanh.f32 %v472_v35 }
 0x2c3   :  { %819 = vtanh.f32 %v467_v37  ;;  %v736_v39 = vpop.f32.mrb[6].mxu0 }
 0x2c4   :  { %v482_v41 = vadd.f32 %v736_v39, %v385_v38  ;;  %v476_v42 = vpop.f32.mrb[7].mxu0 }
 0x2c5   :  { %v477_v43 = vadd.f32 %v476_v42, %v380_v40 }
 0x2c6   :  { %821 = vtanh.f32 %v482_v41 }
 0x2c7   :  { %823 = vtanh.f32 %v477_v43 }
 0x2cc   :  { %v818_v44 = vpop.eup %817 }
 0x2cd   :  { %v820_v45 = vpop.eup %819 }
 0x2ce   :  { %v781_v46 = vpack.c.bf16 %v818_v44, %v820_v45 }
 0x2d0   :  { %v822_v47 = vpop.eup %821  ;;  %782 = vmatpush3.bf16.msra.mxu1 %v781_v46 }
 0x2d1   :  { %v824_v48 = vpop.eup %823  ;;  %783 = vmatprep.subr.bf16.mxu1 %v828_v30 }
 0x2d2   :  { %v784_v49 = vpack.c.bf16 %v822_v47, %v824_v48 }
 0x2d4   :  { %785 = vmatpush3.bf16.msra.mxu1 %v784_v49 }
 0x2d7   :  { %746 = vmatmul.mubr.msk.f32.vlgmr.msra.gmra.mrb[8].mxu1 %vm64_vm0, %v489_v50 }
 0x3aa   :  { %v565_v52 = vpop.f32.mrb[8].mxu1 }
 0x3ab   :  { %v566_v53 = vadd.f32 %v565_v52, %v494_v51  ;;  %v747_v54 = vpop.f32.mrb[9].mxu1 }
 0x3ad   :  { %v570_v55 = vrot.slane %v566_v53, 6  ;;  %622 = vst.msk [vmem:[%s1030_s9 - $0x2] sm:$0xf0] %vm621_vm3, %v566_v53  ;;  %v573_v57 = vand.u32 2147483647, %v566_v53  ;;  %vm604_vm9 = vcmp.eq.f32.partialorder %v566_v53, 0.0  ;;  %vm607_vm10 = vcmp.ne.f32.partialorder %v566_v53, %v566_v53 }
 0x3ae   :  { %v617_v27 = vand.u32 2147483648, %v566_v53 }
 0x3af   :  { %v572_v56 = vand.u32 2147483647, %v570_v55  ;;  %vm602_vm5 = vcmp.lt.s32.totalorder %v570_v55, 0  ;;  %vm606_vm6 = vcmp.ne.f32.partialorder %v570_v55, %v570_v55  ;;  %vm599_vm7 = vcmp.lt.f32.partialorder %v570_v55, 0.0 }
 0x3b0   :  { %v603_v20 = vsel %vm602_vm5, 3.1415927, %v830_v31  ;;  %vm608_vm11 = vmor %vm606_vm6, %vm607_vm10  ;;  %vm613_vm12 = vcmp.eq.s32.totalorder %v573_v57, inf  ;;  %v611_v24 = vsel %vm599_vm7, 2.3561945, %v831_v23 }
 0x3b1   :  { %v575_v58 = vmax.f32 %v572_v56, %v573_v57  ;;  %v574_v59 = vmin.f32 %v572_v56, %v573_v57  ;;  %vm596_vm4 = vcmp.gt.f32.partialorder %v573_v57, %v572_v56  ;;  %vm612_vm8 = vcmp.eq.s32.totalorder %v572_v56, inf }
 0x3b2   :  { %vm614_vm13 = vmand %vm612_vm8, %vm613_vm12 }
 0x3b3   :  { %825 = vrcp.f32 %v575_v58 }
 0x3bd   :  { %v826_v60 = vpop.eup %825 }
 0x3be   :  { %v577_v61 = vmul.f32 %v826_v60, %v574_v59 }
 0x3c0   :  { %v578_v62 = vmul.f32 %v577_v61, %v577_v61 }
 0x3c2   :  { %v579_v63 = vmul.f32 0.002785687, %v578_v62 }
 0x3c4   :  { %v580_v0 = vadd.f32 -0.015866, %v579_v63 }
 0x3c6   :  { %v581_v1 = vmul.f32 %v580_v0, %v578_v62 }
 0x3c8   :  { %v582_v2 = vadd.f32 0.04247222, %v581_v1 }
 0x3ca   :  { %v583_v3 = vmul.f32 %v582_v2, %v578_v62 }
 0x3cc   :  { %v584_v4 = vadd.f32 -0.074975304, %v583_v3 }
 0x3ce   :  { %v585_v5 = vmul.f32 %v584_v4, %v578_v62 }
 0x3d0   :  { %v586_v6 = vadd.f32 0.1064488, %v585_v5 }
 0x3d2   :  { %v587_v7 = vmul.f32 %v586_v6, %v578_v62 }
 0x3d4   :  { %v588_v8 = vadd.f32 -0.14207031, %v587_v7 }
 0x3d6   :  { %v589_v9 = vmul.f32 %v588_v8, %v578_v62 }
 0x3d8   :  { %v590_v10 = vadd.f32 0.19993454, %v589_v9 }
 0x3da   :  { %v591_v11 = vmul.f32 %v590_v10, %v578_v62 }
 0x3dc   :  { %v592_v12 = vadd.f32 -0.33333147, %v591_v11 }
 0x3de   :  { %v593_v13 = vmul.f32 %v592_v12, %v578_v62 }
 0x3e0   :  { %v594_v14 = vmul.f32 %v593_v13, %v577_v61 }
 0x3e2   :  { %v595_v15 = vadd.f32 %v594_v14, %v577_v61 }
 0x3e4   :  { %v597_v16 = vsub.f32 1.5707964, %v595_v15 }
 0x3e6   :  { %v598_v17 = vsel %vm596_vm4, %v597_v16, %v595_v15 }
 0x3e7   :  { %v600_v18 = vsub.f32 3.1415927, %v598_v17 }
 0x3e9   :  { %v601_v19 = vsel %vm599_vm7, %v600_v18, %v598_v17 }
 0x3ea   :  { %v605_v21 = vsel %vm604_vm9, %v603_v20, %v601_v19 }
 0x3eb   :  { %v609_v22 = vsel %vm608_vm11, nan, %v605_v21 }
 0x3ec   :  { %v615_v25 = vsel %vm614_vm13, %v611_v24, %v609_v22 }
 0x3ed   :  { %v616_v26 = vand.u32 2147483647, %v615_v25 }
 0x3ef   :  { %v618_v28 = vor.u32 %v617_v27, %v616_v26 }
 0x3f1   :  { %620 = vst.msk [vmem:[%s1030_s9 - $0x2] sm:$0xc] %vm619_vm14, %v618_v28 }

</bundles_post_ra>
